<compile_context>
chip_gen: v7x
topology: tpu7x:2x2x1
jax: 0.10.0
libtpu: 0.0.40
codegen_flags: <defaults>
</compile_context>

<pallas_src>
import functools

import jax
import jax.numpy as jnp
from jax.experimental import pallas as pl
from jax.experimental.pallas import tpu as pltpu


def _window_kernel(x_ref, o_ref, *, stride, len_window, t_repetition):
    # x_ref: (1, tn, L)   one (batch, channel-tile) block resident in VMEM
    # o_ref: (1, tn, T*W) corresponding output block
    #
    # Statically-unrolled window extraction; each iteration is a direct
    # slice-to-slice copy (load window, store window), so peak live data is a
    # single window. The whole o_ref block is written back with one DMA at the
    # end of the grid step.
    for t in range(t_repetition):
        o_ref[:, :, t * len_window:(t + 1) * len_window] = (
            x_ref[:, :, t * stride:t * stride + len_window]
        )


def _pick_channel_tile(N, L, tw, dtype_bytes, vmem_budget_bytes=12 * 1024 * 1024):
    """Pick tn so the double-buffered (in + out) block stays under budget."""
    per_row_bytes = (L + tw) * dtype_bytes
    # in + out, each double-buffered by the Pallas pipeline.
    max_rows = max(1, vmem_budget_bytes // (2 * per_row_bytes))
    if N <= max_rows:
        return N  # full-extent block: always layout-legal
    sublane = max(8, 32 // max(1, dtype_bytes))  # 8 (f32) / 16 (bf16) / 32 (i8)
    tn = max(sublane, (max_rows // sublane) * sublane)
    return min(tn, N)


def dyg_preconstructor(x, *, stride, len_window, t_repetition):
    """Pallas implementation of DygPreconstructor.forward.

    x: [B, N, L]  ->  returns [B, N, t_repetition, len_window]
    """
    B, N, L = x.shape
    assert t_repetition >= 1, "t_repetition must be >= 1"
    assert (t_repetition - 1) * stride + len_window <= L, "windows exceed input length"

    tw = t_repetition * len_window
    dtype_bytes = jnp.dtype(x.dtype).itemsize
    tn = _pick_channel_tile(N, L, tw, dtype_bytes)
    n_tiles = pl.cdiv(N, tn)

    kernel = functools.partial(
        _window_kernel,
        stride=stride,
        len_window=len_window,
        t_repetition=t_repetition,
    )

    out_flat = pl.pallas_call(
        kernel,
        out_shape=jax.ShapeDtypeStruct((B, N, tw), x.dtype),
        grid_spec=pltpu.PrefetchScalarGridSpec(
            num_scalar_prefetch=0,
            grid=(B, n_tiles),
            in_specs=[
                pl.BlockSpec((1, tn, L), lambda b, n: (b, n, 0)),
            ],
            out_specs=pl.BlockSpec((1, tn, tw), lambda b, n: (b, n, 0)),
        ),
        compiler_params=pltpu.CompilerParams(
            # Each step writes a disjoint output block -> shardable across
            # TensorCores (2 TCs on v7x); no-op on single-TC v5e/v6e.
            dimension_semantics=("parallel", "parallel"),
            vmem_limit_bytes=32 * 1024 * 1024,
        ),
        cost_estimate=pl.CostEstimate(
            flops=0,
            transcendentals=0,
            bytes_accessed=B * N * (L + tw) * dtype_bytes,
        ),
    )(x)

    # Free reshape over contiguous trailing dims -> PyTorch layout [B, N, T, W].
    return out_flat.reshape(B, N, t_repetition, len_window)


def _reference(x, *, stride, len_window, t_repetition):
    """Pure-JAX reference mirroring the PyTorch forward exactly."""
    slices = [
        x[:, :, t * stride:t * stride + len_window] for t in range(t_repetition)
    ]
    return jnp.stack(slices, axis=2)


if __name__ == "__main__":
    # cfg equivalent (module has no learned parameters)
    stride = 2
    len_window = 8
    t_repetition = 5

    B, N, L = 2, 4, 16  # (t_repetition-1)*stride + len_window = 16 <= L

    key = jax.random.PRNGKey(0)
    x = jax.random.normal(key, (B, N, L), dtype=jnp.float32)

    out = dyg_preconstructor(
        x, stride=stride, len_window=len_window, t_repetition=t_repetition
    )
    out = jax.block_until_ready(out)

    ref = _reference(
        x, stride=stride, len_window=len_window, t_repetition=t_repetition
    )

    assert out.shape == (B, N, t_repetition, len_window), out.shape
    assert out.dtype == x.dtype
    assert jnp.allclose(out, ref), "mismatch vs reference"

    print("KERNEL_OK")
</pallas_src>

<mosaic_0001>
module attributes {stable_mosaic.version = 11 : i64} {
  func.func @_window_kernel(%arg0: i32, %arg1: i32, %arg2: memref<1x4x16xf32, #tpu.memory_space<vmem>>, %arg3: memref<1x4x40xf32, #tpu.memory_space<vmem>>) attributes {dimension_semantics = [#tpu.dimension_semantics<parallel>, #tpu.dimension_semantics<parallel>], iteration_bounds = array<i64: 2, 1>, scalar_prefetch = 0 : i64, scratch_operands = 0 : i64, tpu.core_type = #tpu.core_type<tc>, window_params = [{transform_indices = @transform_0, window_bounds = array<i64: 1, 4, 16>}, {transform_indices = @transform_1, window_bounds = array<i64: 1, 4, 40>}]} {
    %c0 = arith.constant 0 : index
    %c0_0 = arith.constant 0 : index
    %c0_1 = arith.constant 0 : index
    %0 = vector.load %arg2[%c0, %c0_0, %c0_1] : memref<1x4x16xf32, #tpu.memory_space<vmem>>, vector<1x4x8xf32>
    %c0_2 = arith.constant 0 : index
    %c0_3 = arith.constant 0 : index
    %c0_4 = arith.constant 0 : index
    %1 = vector.load %arg3[%c0_2, %c0_3, %c0_4] : memref<1x4x40xf32, #tpu.memory_space<vmem>>, vector<1x4x8xf32>
    tpu.vector_store %arg3[%c0_2, %c0_3, %c0_4], %0 {strides = array<i32>} : memref<1x4x40xf32, #tpu.memory_space<vmem>>, vector<1x4x8xf32>,
    %c0_5 = arith.constant 0 : index
    %c0_6 = arith.constant 0 : index
    %c2 = arith.constant 2 : index
    %2 = vector.load %arg2[%c0_5, %c0_6, %c2] : memref<1x4x16xf32, #tpu.memory_space<vmem>>, vector<1x4x8xf32>
    %c0_7 = arith.constant 0 : index
    %c0_8 = arith.constant 0 : index
    %c8 = arith.constant 8 : index
    %3 = vector.load %arg3[%c0_7, %c0_8, %c8] : memref<1x4x40xf32, #tpu.memory_space<vmem>>, vector<1x4x8xf32>
    tpu.vector_store %arg3[%c0_7, %c0_8, %c8], %2 {strides = array<i32>} : memref<1x4x40xf32, #tpu.memory_space<vmem>>, vector<1x4x8xf32>,
    %c0_9 = arith.constant 0 : index
    %c0_10 = arith.constant 0 : index
    %c4 = arith.constant 4 : index
    %4 = vector.load %arg2[%c0_9, %c0_10, %c4] : memref<1x4x16xf32, #tpu.memory_space<vmem>>, vector<1x4x8xf32>
    %c0_11 = arith.constant 0 : index
    %c0_12 = arith.constant 0 : index
    %c16 = arith.constant 16 : index
    %5 = vector.load %arg3[%c0_11, %c0_12, %c16] : memref<1x4x40xf32, #tpu.memory_space<vmem>>, vector<1x4x8xf32>
    tpu.vector_store %arg3[%c0_11, %c0_12, %c16], %4 {strides = array<i32>} : memref<1x4x40xf32, #tpu.memory_space<vmem>>, vector<1x4x8xf32>,
    %c0_13 = arith.constant 0 : index
    %c0_14 = arith.constant 0 : index
    %c6 = arith.constant 6 : index
    %6 = vector.load %arg2[%c0_13, %c0_14, %c6] : memref<1x4x16xf32, #tpu.memory_space<vmem>>, vector<1x4x8xf32>
    %c0_15 = arith.constant 0 : index
    %c0_16 = arith.constant 0 : index
    %c24 = arith.constant 24 : index
    %7 = vector.load %arg3[%c0_15, %c0_16, %c24] : memref<1x4x40xf32, #tpu.memory_space<vmem>>, vector<1x4x8xf32>
    tpu.vector_store %arg3[%c0_15, %c0_16, %c24], %6 {strides = array<i32>} : memref<1x4x40xf32, #tpu.memory_space<vmem>>, vector<1x4x8xf32>,
    %c0_17 = arith.constant 0 : index
    %c0_18 = arith.constant 0 : index
    %c8_19 = arith.constant 8 : index
    %8 = vector.load %arg2[%c0_17, %c0_18, %c8_19] : memref<1x4x16xf32, #tpu.memory_space<vmem>>, vector<1x4x8xf32>
    %c0_20 = arith.constant 0 : index
    %c0_21 = arith.constant 0 : index
    %c32 = arith.constant 32 : index
    %9 = vector.load %arg3[%c0_20, %c0_21, %c32] : memref<1x4x40xf32, #tpu.memory_space<vmem>>, vector<1x4x8xf32>
    tpu.vector_store %arg3[%c0_20, %c0_21, %c32], %8 {strides = array<i32>} : memref<1x4x40xf32, #tpu.memory_space<vmem>>, vector<1x4x8xf32>,
    return
  }
  func.func @transform_0(%arg0: i32, %arg1: i32) -> (i32, i32, i32) {
    %c0_i32 = arith.constant 0 : i32
    %c0_i32_0 = arith.constant 0 : i32
    return %arg0, %arg1, %c0_i32 : i32, i32, i32
  }
  func.func @transform_1(%arg0: i32, %arg1: i32) -> (i32, i32, i32) {
    %c0_i32 = arith.constant 0 : i32
    %c0_i32_0 = arith.constant 0 : i32
    return %arg0, %arg1, %c0_i32 : i32, i32, i32
  }
}

</mosaic_0001>

<bundles_post_ra>
// kernel: tpu_custom_call.1
= control target key start
LH: loop header
LB: loop body
LE: loop exit
PB: predicated region body
PF: predicated region fallthrough
CT: control target
= control target key end

     0   :  { %6 = vsyncpa [#allocation3], 0  ;;  %s656_s0 = inlined_call_operand.hbm [shape: f32[2,4,16], index: 0, kind: input, shape index: {}]   ;;  %s657_s1 = inlined_call_operand.hbm [shape: f32[2,4,40], index: 1, kind: output, shape index: {}]  }
   0x1   :  { %8 = vsyncpa [#allocation3 + $0x1], 0 }
   0x2   :  { %9 = vsyncpa [#allocation4], 0 }
   0x3   :  { %11 = vsyncpa [#allocation4 + $0x1], 0  ;;  %s484_s6 = smov 0   ;;  %s486_s7 = smov 0  }
   0x4   :  { %s488_s8 = smov 0   ;;  %s490_s9 = smov 0  }
   0x5   :  { %s492_s10 = smov 0   ;;  %s494_s11 = smov 0  }
   0x6 LB: > { %s275_s12 = sadd.s32 4294967295, %s466_s11   ;;  %s276_s13 = sadd.s32 4294967294, %s466_s11   ;;  %s466_s11 = sphi %s494_s11, %s17_s11   ;;  %s462_s10 = sphi %s492_s10, %s673_s10   ;;  %s458_s9 = sphi %s490_s9, %s672_s9   ;;  %s454_s8 = sphi %s488_s8, %s671_s8   ;;  %s450_s7 = sphi %s486_s7, %s670_s7   ;;  %s446_s6 = sphi %s484_s6, %s669_s6  }
   0x7   : > { %s29_s14 = sadd.s32 1, %s462_s10  ;;  %s38_s15 = sadd.s32 1, %s454_s8 }
   0x8   : > { %p31_p0 = scmp.ge.s32.totalorder %s29_s14, 2  ;;  %p45_p1 = scmp.ne.s32.totalorder %s454_s8, %s450_s7 }
   0x9   : > { %p46_p2 = scmp.eq.s32.totalorder %s466_s11, 0  ;;  %p51_p3 = scmp.ne.s32.totalorder %s450_s7, %s446_s6 }
   0xa   : > { %s675_s14 = smov (%p31_p0, %s29_s14), 0  ;;  %p52_p5 = scmp.eq.s32.totalorder %s275_s12, 0 }
   0xb   : > { %p525_p4 = por %p46_p2, %p45_p1  ;;  %s33_s17 = ssub.s32 %s462_s10, %s675_s14 }
   0xc   : > { %p77_p6 = scmp.eq.s32.totalorder %s275_s12, 1  ;;  %p36_p7 = scmp.eq.s32.totalorder %s33_s17, 0 }
   0xd   : > { %p531_p8 = por %p52_p5, %p51_p3  ;;  %p83_p10 = scmp.eq.s32.totalorder %s276_s13, 1 }
   0xe   : > { %p535_p9 = por %p77_p6, %p45_p1  ;;  %p300_p13 = scmp.lt.s32.totalorder %s466_s11, 2 }
   0xf   : > { %s540_s20 = scalar_select %p36_p7, %s454_s8, %s38_s15  }
  0x10   : > { %s661_s19 = scalar_select %p535_p9, 1, 0 }
  0x11   : > { %p542_p11 = por %p83_p10, %p51_p3  ;;  %s103_s22 = sand.u32 1, %s454_s8  }
  0x12   : > { %s279_s23 = sshll.u32 %s103_s22, 2  ;;  %s280_s24 = sshll.u32 %s462_s10, 6 }
  0x13   : > { %s662_s21 = scalar_select %p542_p11, 1, 0 }
  0x14   : > { %s553_s27 = scalar_lea.hbm %s656_s0, %s280_s24  ;;  %s107_s28 = scalar_lea.vmem [#allocation2], %s279_s23 }
  0x15   : > { %s115_s29 = sshll.u32 %s107_s28, 4  ;;  %p559_p0 = pnand %p300_p13, %p525_p4  ;;  %s555_s29 = int_to_ptr.vmem [resolvable:$true] %s115_s29 }
  0x16   : > { %s104_s2 = scalar_lea.sflag [#allocation3], %s103_s22  ;;  %s354_s3 = scalar_lea.hbm %s553_s27, 64 }
  0x17   : > { %p355_p3 = scmp.ne.s32.totalorder %s553_s27, %s354_s3  ;;  %p356_p5 = pneg %p559_p0 }
  0x18   : > { %s359_s12 = scalar_lea.hbm %s656_s0, 128  ;;  %p360_p4 = scmp.lt.u32.totalorder %s553_s27, %s656_s0 }
  0x19   : > { %p357_p6 = pnand %p356_p5, %p355_p3  ;;  %p361_p10 = scmp.lt.u32.totalorder %s359_s12, %s354_s3 }
  0x1a   : > { %p363_p12 = scmp.lt.u32.totalorder %s354_s3, %s553_s27 }
  0x1b   : > { %p358_p7 = pneg %p357_p6  ;;  %p362_p13 = por %p361_p10, %p360_p4 }
  0x1d   : > { %p364_p1 = por %p363_p12, %p362_p13 }
  0x1f   : > { %p365_p2 = pnand %p364_p1, %p358_p7 }
  0x21   : > { %368 = shalt.err (!%p365_p2)
}
  0x22   : > { %s369_s16 = scalar_lea.vmem %s555_s29, 64  ;;  %s468_s17 = smov [#allocation2]  }
  0x23   : > { %p370_p3 = scmp.ne.s32.totalorder %s555_s29, %s369_s16  ;;  %s374_s22 = sshll.u32 %s468_s17, 4  ;;  %s375_s22 = int_to_ptr.vmem [resolvable:$false] %s374_s22 }
  0x24   : > { %s376_s23 = scalar_lea.vmem %s375_s22, 128  ;;  %p377_p9 = scmp.lt.s32.totalorder %s555_s29, %s375_s22 }
  0x25   : > { %p372_p6 = pnand %p370_p3, %p356_p5  ;;  %p378_p4 = scmp.lt.s32.totalorder %s376_s23, %s369_s16 }
  0x27   : > { %p373_p11 = pneg %p372_p6  ;;  %p379_p10 = por %p378_p4, %p377_p9 }
  0x29   : > { %p380_p12 = pnand %p379_p10, %p373_p11 }
  0x2b   : > { %383 = shalt.err (!%p380_p12)
}
  0x2c   : > { %295 = dma.hbm_to_vmem [thread:$0]  (!%p559_p0), %s553_s27, 64, %s555_s29, %s104_s2  }
  0x2d   : > { %p664_p1 = scmp.lt.s32.totalorder %s466_s11, 3  ;;  %p665_p2 = scmp.ge.s32.totalorder %s466_s11, 1 }
  0x2f   : > { %p121_p5 = pnand %p665_p2, %p664_p1 }
  0x30   : > { %s595_s24 = sand.u32 (!%p121_p5), 1, %s450_s7  }
  0x31   : > { %124 = sbr.rel (%p121_p5) target bundleno = 193 (0xc1), region = 24  ;;  %s282_s25 = sshll.u32 (!%p121_p5), %s595_s24, 2 }
  0x32   : > { %s127_s26 = scalar_lea.sflag (!%p121_p5), [#allocation3], %s595_s24  ;;  %s130_s28 = scalar_lea.vmem (!%p121_p5), [#allocation2], %s282_s25 }
  0x38   : > { %437 = dma.done.wait (%p531_p8), %s127_s26, 64  }
  0x39   : > { %439 = vsyncadd (%p531_p8), %s127_s26, 4294967232  ;;  %vm150_vm0 = vcmask 60416   ;;  %v152_v0 = vld [vmem:[%s130_s28] sm:$0xf]  ;;  %s469_s27 = smov 6   ;;  %s470_s29 = smov 18  }
  0x3a   : > { %v166_v1 = vld [vmem:[%s130_s28] sm:$0xf]  ;;  %154 = vrot.lane.b32.xlu0 %v152_v0, %s469_s27  ;;  %s148_s30 = scalar_lea.vmem [#allocation5], %s282_s25  ;;  %s471_s2 = smov 12   ;;  %vm157_vm1 = vcmask 126016   ;;  %vm164_vm2 = vcmask 191616  }
  0x3b   : > { %168 = vrot.lane.b32.xlu1 %v166_v1, %s470_s29  ;;  %v149_v2 = vld [vmem:[%s130_s28] sm:$0xf]  ;;  %s472_s3 = smov 24   ;;  %s285_s18 = sshll.u32 %s458_s9, 6  ;;  %vm171_vm3 = vcmask 257216   ;;  %vm178_vm4 = vcmask 322816  }
  0x3c   : > { %v159_v3 = vld [vmem:[%s130_s28] sm:$0xf]  ;;  %151 = vst.msk [vmem:[%s148_s30] sm:$0xf] %vm150_vm0, %v149_v2  ;;  %s195_s4 = sshll.u32 %s148_s30, 4  ;;  %s607_s13 = scalar_lea.hbm %s657_s1, %s285_s18  ;;  %s609_s4 = int_to_ptr.vmem [resolvable:$true] %s195_s4 }
  0x3d   : > { %v173_v4 = vld [vmem:[%s130_s28] sm:$0xf]  ;;  %s181_s15 = scalar_lea.sflag [#allocation4], %s595_s24  ;;  %s384_s9 = scalar_lea.vmem %s609_s4, 64 }
  0x3e   : > { %161 = vrot.lane.b32.xlu0 %v159_v3, %s471_s2  ;;  %p385_p8 = scmp.ne.s32.totalorder %s609_s4, %s384_s9  ;;  %p666_p9 = scmp.ne.s32.totalorder %s661_s19, 0 }
  0x3f   : > { %175 = vrot.lane.b32.xlu1 %v173_v4, %s472_s3  ;;  %s473_s16 = smov [#allocation5]  }
  0x40   : > { %p386_p11 = pnand %p385_p8, %p666_p9  ;;  %s388_s17 = sshll.u32 %s473_s16, 4  ;;  %s389_s17 = int_to_ptr.vmem [resolvable:$false] %s388_s17 }
  0x41   : > { %s390_s22 = scalar_lea.vmem %s389_s17, 128  ;;  %p391_p7 = scmp.lt.s32.totalorder %s609_s4, %s389_s17 }
  0x42   : > { %p387_p0 = pneg %p386_p11  ;;  %p392_p13 = scmp.lt.s32.totalorder %s390_s22, %s384_s9 }
  0x44   : > { %p393_p3 = por %p392_p13, %p391_p7 }
  0x46   : > { %p394_p6 = pnand %p393_p3, %p387_p0 }
  0xac   : > { %v155_v5 = vpop.permute.xlu0 %154 }
  0xad   : > { %v169_v6 = vpop.permute.xlu1 %168  ;;  %158 = vst.msk [vmem:[%s148_s30] sm:$0xf] %vm157_vm1, %v155_v5 }
  0xb0   : > { %v162_v7 = vpop.permute.xlu0 %161 }
  0xb1   : > { %v176_v8 = vpop.permute.xlu1 %175  ;;  %165 = vst.msk [vmem:[%s148_s30] sm:$0xf] %vm164_vm2, %v162_v7 }
  0xb2   : > { %172 = vst.msk [vmem:[%s148_s30] sm:$0xf] %vm171_vm3, %v169_v6 }
  0xb3   : > { %179 = vst.msk [vmem:[%s148_s30] sm:$0xf] %vm178_vm4, %v176_v8 }
  0xb4   : > { %397 = shalt.err (!%p394_p6)
}
  0xb5   : > { %s398_s23 = scalar_lea.hbm %s607_s13, 64  ;;  %s402_s26 = scalar_lea.hbm %s657_s1, 128 }
  0xb6   : > { %p399_p4 = scmp.ne.s32.totalorder %s607_s13, %s398_s23  ;;  %p403_p1 = scmp.lt.u32.totalorder %s607_s13, %s657_s1 }
  0xb7   : > { %p404_p2 = scmp.lt.u32.totalorder %s402_s26, %s398_s23  ;;  %p406_p8 = scmp.lt.u32.totalorder %s398_s23, %s607_s13 }
  0xb8   : > { %p400_p10 = pnand %p399_p4, %p666_p9 }
  0xb9   : > { %p405_p5 = por %p404_p2, %p403_p1 }
  0xba   : > { %p401_p12 = pneg %p400_p10 }
  0xbb   : > { %p407_p11 = por %p406_p8, %p405_p5 }
  0xbd   : > { %p408_p0 = pnand %p407_p11, %p401_p12 }
  0xbf   : > { %411 = shalt.err (!%p408_p0)
}
  0xc0   : > { %290 = dma.vmem_to_hbm [thread:$0]  (%p666_p9), %s609_s4, 64, %s607_s13, %s181_s15  }
  0xc1 PF: > { %s207_s29 = sand.u32 1, %s446_s6   ;;  %p667_p7 = scmp.ne.s32.totalorder %s662_s21, 0 }
  0xc2   : > { %p668_p13 = scmp.ge.s32.totalorder %s466_s11, 2  ;;  %s208_s30 = scalar_lea.sflag [#allocation4], %s207_s29 }
  0xc4   : > { %p297_p3 = pnand %p668_p13, %p667_p7 }
  0xc6   : > { %441 = dma.done.wait (!%p297_p3), %s208_s30, 64  }
  0xc7   : > { %443 = vsyncadd (!%p297_p3), %s208_s30, 4294967232  ;;  %s17_s11 = sadd.s32 1, %s466_s11   ;;  %s669_s6 = smov %s450_s7 }
  0xc8   : > { %p14_p6 = scmp.ge.s32.totalorder %s17_s11, 4   ;;  %s670_s7 = smov %s454_s8 }
  0xc9   : > { %s671_s8 = smov %s540_s20  ;;  %s672_s9 = smov %s462_s10 }
  0xca   : > { %s673_s10 = smov %s675_s14  ;;  %16 = sbr.rel (!%p14_p6) target bundleno = 6 (0x6), region = 69 }
  0xd1   :  { %213 = vsyncpa [#allocation3], 1 }
  0xd2   :  { %215 = vsyncpa [#allocation3 + $0x1], 1 }
  0xd3   :  { %216 = vsyncpa [#allocation4], 1 }
  0xd4   :  { %218 = vsyncpa [#allocation4 + $0x1], 1 }

</bundles_post_ra>
